<compile_context>
chip_gen: v5e
topology: v5e:2x2
jax: 0.10.0
libtpu: 0.0.40
codegen_flags: <defaults>
</compile_context>

<pallas_src>
import functools

import jax
import jax.numpy as jnp
from jax import lax
from jax.experimental import pallas as pl
from jax.experimental.pallas import tpu as pltpu


def _ce_label_smooth_kernel(x_ref, t_ref, o_ref, *, epsilon, use_label_smoothing,
                            total_batch, num_classes):
    """One batch tile: log-softmax reduction + smoothed-CE partial sum."""
    i = pl.program_id(0)

    x = x_ref[...].astype(jnp.float32)           # (TB, C) cast in-kernel (free on VPU)
    t = t_ref[...]                               # (TB, 1) int32 class indices
    tb, c = x.shape                              # static block shape; c == num_classes

    # Numerically stable log-sum-exp along the class (lane) axis.
    m = jnp.max(x, axis=1, keepdims=True)                              # (TB, 1)
    shifted = x - m                                                    # (TB, C)
    lse = jnp.log(jnp.sum(jnp.exp(shifted), axis=1, keepdims=True))    # (TB, 1)

    # shifted[row, target[row]] via lane-iota compare (no scatter/gather on TPU).
    class_ids = lax.broadcasted_iota(jnp.int32, (tb, c), 1)
    shifted_at_t = jnp.sum(jnp.where(class_ids == t, shifted, 0.0),
                           axis=1, keepdims=True)                      # (TB, 1)

    # -log_probs[target] = lse - shifted[target]
    nll = lse - shifted_at_t                                           # (TB, 1)

    if use_label_smoothing:
        # sum_j log_probs[j] = sum(shifted) - C * lse   (algebraic form; no one-hot)
        sum_log_probs = (jnp.sum(shifted, axis=1, keepdims=True)
                         - jnp.float32(num_classes) * lse)             # (TB, 1)
        row_loss = ((1.0 - epsilon) * nll
                    - (epsilon / num_classes) * sum_log_probs)
    else:
        row_loss = nll

    # Mask padded rows of a ragged final batch tile (garbage rows -> 0).
    row_ids = i * tb + lax.broadcasted_iota(jnp.int32, (tb, 1), 0)
    row_loss = jnp.where(row_ids < total_batch, row_loss, 0.0)

    partial = jnp.sum(row_loss)                                        # scalar
    # Lane-dense unmasked store; wrapper reads lane 0 of each tile's row.
    o_ref[...] = jnp.full((1, 1, 128), partial, dtype=jnp.float32)


def _pick_tile_batch(b, c, in_itemsize):
    """Largest batch tile fitting a conservative VMEM budget (v7x-safe)."""
    budget = 36 * 1024 * 1024
    # double-buffered input tile + ~2 live f32 (TB, C) temporaries
    per_row = 2 * c * in_itemsize + 2 * c * 4
    tb = int(min(budget // max(per_row, 1), b, 1024))
    if tb >= b:
        return b
    return max(8, (tb // 8) * 8)


def cross_entropy_label_smooth(inputs, targets, *, num_classes, epsilon=0.1,
                               use_label_smoothing=True):
    """inputs: (B, C) float (any float dtype); targets: (B,) int. Returns scalar f32."""
    b, c = inputs.shape
    assert c == num_classes
    if not jnp.issubdtype(inputs.dtype, jnp.floating):
        inputs = inputs.astype(jnp.float32)
    t2d = targets.astype(jnp.int32).reshape(b, 1)

    in_itemsize = jnp.dtype(inputs.dtype).itemsize
    tb = _pick_tile_batch(b, c, in_itemsize)
    num_tiles = pl.cdiv(b, tb)

    per_row = 2 * c * in_itemsize + 2 * c * 4
    vmem_limit = int(min(56 * 1024 * 1024,
                         max(8 * 1024 * 1024, int(1.5 * per_row * tb))))

    kernel = functools.partial(
        _ce_label_smooth_kernel,
        epsilon=float(epsilon),
        use_label_smoothing=bool(use_label_smoothing),
        total_batch=b,
        num_classes=c,
    )

    partials = pl.pallas_call(
        kernel,
        out_shape=jax.ShapeDtypeStruct((num_tiles, 1, 128), jnp.float32),
        grid_spec=pltpu.PrefetchScalarGridSpec(
            num_scalar_prefetch=0,
            grid=(num_tiles,),
            in_specs=[
                pl.BlockSpec((tb, c), lambda i: (i, 0)),   # logits tile (native dtype)
                pl.BlockSpec((tb, 1), lambda i: (i, 0)),   # target indices tile
            ],
            out_specs=pl.BlockSpec((1, 1, 128), lambda i: (i, 0, 0)),
        ),
        compiler_params=pltpu.CompilerParams(
            dimension_semantics=("parallel",),             # megacore-shardable on v7x
            vmem_limit_bytes=vmem_limit,
        ),
    )(inputs, t2d)

    # Tiny cross-tile reduction + global-batch mean done in JAX outside the kernel.
    return jnp.sum(partials[:, 0, 0]) / jnp.float32(b)


def _reference(inputs, targets, num_classes, epsilon=0.1, use_label_smoothing=True):
    log_probs = jax.nn.log_softmax(inputs.astype(jnp.float32), axis=1)
    t = jax.nn.one_hot(targets, num_classes, dtype=jnp.float32)
    if use_label_smoothing:
        t = (1.0 - epsilon) * t + epsilon / num_classes
    return (-t * log_probs).mean(0).sum()


if __name__ == "__main__":
    key = jax.random.PRNGKey(0)
    k1, k2 = jax.random.split(key)

    batch = 8
    num_classes = 16

    inputs = jax.random.normal(k1, (batch, num_classes), dtype=jnp.float32)
    targets = jax.random.randint(k2, (batch,), 0, num_classes, dtype=jnp.int32)

    loss = cross_entropy_label_smooth(
        inputs, targets, num_classes=num_classes, epsilon=0.1,
        use_label_smoothing=True)
    loss = jax.block_until_ready(loss)
    ref = _reference(inputs, targets, num_classes, epsilon=0.1,
                     use_label_smoothing=True)
    assert jnp.allclose(loss, ref, rtol=1e-5, atol=1e-5), (loss, ref)

    # Plain (un-smoothed) CE path of the module's forward().
    loss_ns = cross_entropy_label_smooth(
        inputs, targets, num_classes=num_classes, epsilon=0.1,
        use_label_smoothing=False)
    loss_ns = jax.block_until_ready(loss_ns)
    ref_ns = _reference(inputs, targets, num_classes, epsilon=0.1,
                        use_label_smoothing=False)
    assert jnp.allclose(loss_ns, ref_ns, rtol=1e-5, atol=1e-5), (loss_ns, ref_ns)

    print("KERNEL_OK")
</pallas_src>

<mosaic_0001>
module attributes {stable_mosaic.version = 11 : i64} {
  func.func @_ce_label_smooth_kernel(%arg0: i32, %arg1: memref<8x16xf32, #tpu.memory_space<vmem>>, %arg2: memref<8x1xi32, #tpu.memory_space<vmem>>, %arg3: memref<1x1x128xf32, #tpu.memory_space<vmem>>) attributes {dimension_semantics = [#tpu.dimension_semantics<parallel>], iteration_bounds = array<i64: 1>, scalar_prefetch = 0 : i64, scratch_operands = 0 : i64, tpu.core_type = #tpu.core_type<tc>, window_params = [{transform_indices = @transform_0, window_bounds = array<i64: 8, 16>}, {transform_indices = @transform_1, window_bounds = array<i64: 8, 1>}, {transform_indices = @transform_2, window_bounds = array<i64: 1, 1, 128>}]} {
    %c0 = arith.constant 0 : index
    %c0_0 = arith.constant 0 : index
    %0 = vector.load %arg1[%c0, %c0_0] : memref<8x16xf32, #tpu.memory_space<vmem>>, vector<8x16xf32>
    %c0_1 = arith.constant 0 : index
    %c0_2 = arith.constant 0 : index
    %1 = vector.load %arg2[%c0_1, %c0_2] : memref<8x1xi32, #tpu.memory_space<vmem>>, vector<8x1xi32>
    %cst = arith.constant dense<0xFF800000> : vector<8xf32>
    %2 = vector.multi_reduction <maximumf>, %0, %cst [1] : vector<8x16xf32> to vector<8xf32>
    %3 = vector.shape_cast %2 : vector<8xf32> to vector<8x1xf32>
    %4 = vector.broadcast %3 : vector<8x1xf32> to vector<8x16xf32>
    %5 = arith.subf %0, %4 : vector<8x16xf32>
    %6 = math.exp %5 : vector<8x16xf32>
    %cst_3 = arith.constant dense<0.000000e+00> : vector<8xf32>
    %7 = vector.multi_reduction <add>, %6, %cst_3 [1] : vector<8x16xf32> to vector<8xf32>
    %8 = vector.shape_cast %7 : vector<8xf32> to vector<8x1xf32>
    %9 = math.log %8 : vector<8x1xf32>
    %10 = tpu.iota {dimensions = array<i32: 1>} : vector<8x16xi32>
    %11 = vector.broadcast %1 : vector<8x1xi32> to vector<8x16xi32>
    %12 = arith.cmpi eq, %10, %11 : vector<8x16xi32>
    %cst_4 = arith.constant 0.000000e+00 : f32
    %13 = vector.broadcast %cst_4 : f32 to vector<8x16xf32>
    %14 = arith.select %12, %5, %13 : vector<8x16xi1>, vector<8x16xf32>
    %cst_5 = arith.constant dense<0.000000e+00> : vector<8xf32>
    %15 = vector.multi_reduction <add>, %14, %cst_5 [1] : vector<8x16xf32> to vector<8xf32>
    %16 = vector.shape_cast %15 : vector<8xf32> to vector<8x1xf32>
    %17 = arith.subf %9, %16 : vector<8x1xf32>
    %cst_6 = arith.constant dense<0.000000e+00> : vector<8xf32>
    %18 = vector.multi_reduction <add>, %5, %cst_6 [1] : vector<8x16xf32> to vector<8xf32>
    %19 = vector.shape_cast %18 : vector<8xf32> to vector<8x1xf32>
    %cst_7 = arith.constant 1.600000e+01 : f32
    %20 = vector.broadcast %cst_7 : f32 to vector<8x1xf32>
    %21 = arith.mulf %20, %9 : vector<8x1xf32>
    %22 = arith.subf %19, %21 : vector<8x1xf32>
    %cst_8 = arith.constant 0.899999976 : f32
    %23 = vector.broadcast %cst_8 : f32 to vector<8x1xf32>
    %24 = arith.mulf %23, %17 : vector<8x1xf32>
    %cst_9 = arith.constant 6.250000e-03 : f32
    %25 = vector.broadcast %cst_9 : f32 to vector<8x1xf32>
    %26 = arith.mulf %25, %22 : vector<8x1xf32>
    %27 = arith.subf %24, %26 : vector<8x1xf32>
    %c8_i32 = arith.constant 8 : i32
    %28 = arith.muli %arg0, %c8_i32 : i32
    %29 = tpu.iota {dimensions = array<i32: 0>} : vector<8x1xi32>
    %30 = vector.broadcast %28 : i32 to vector<8x1xi32>
    %31 = arith.addi %30, %29 : vector<8x1xi32>
    %c8_i32_10 = arith.constant 8 : i32
    %32 = vector.broadcast %c8_i32_10 : i32 to vector<8x1xi32>
    %33 = arith.cmpi slt, %31, %32 : vector<8x1xi32>
    %cst_11 = arith.constant 0.000000e+00 : f32
    %34 = vector.broadcast %cst_11 : f32 to vector<8x1xf32>
    %35 = arith.select %33, %27, %34 : vector<8x1xi1>, vector<8x1xf32>
    %36 = vector.shape_cast %35 : vector<8x1xf32> to vector<1x8x1xf32>
    %cst_12 = arith.constant dense<0.000000e+00> : vector<1xf32>
    %37 = vector.multi_reduction <add>, %36, %cst_12 [1, 2] : vector<1x8x1xf32> to vector<1xf32>
    %38 = vector.shape_cast %37 : vector<1xf32> to vector<1x1x1xf32>
    %39 = vector.extract %38[0, 0, 0] : f32 from vector<1x1x1xf32>
    %40 = vector.broadcast %39 : f32 to vector<1x1x128xf32>
    %c0_13 = arith.constant 0 : index
    %c0_14 = arith.constant 0 : index
    %c0_15 = arith.constant 0 : index
    %41 = vector.load %arg3[%c0_13, %c0_14, %c0_15] : memref<1x1x128xf32, #tpu.memory_space<vmem>>, vector<1x1x128xf32>
    tpu.vector_store %arg3[%c0_13, %c0_14, %c0_15], %40 {strides = array<i32>} : memref<1x1x128xf32, #tpu.memory_space<vmem>>, vector<1x1x128xf32>,
    return
  }
  func.func @transform_0(%arg0: i32) -> (i32, i32) {
    %c0_i32 = arith.constant 0 : i32
    %c0_i32_0 = arith.constant 0 : i32
    return %arg0, %c0_i32 : i32, i32
  }
  func.func @transform_1(%arg0: i32) -> (i32, i32) {
    %c0_i32 = arith.constant 0 : i32
    %c0_i32_0 = arith.constant 0 : i32
    return %arg0, %c0_i32 : i32, i32
  }
  func.func @transform_2(%arg0: i32) -> (i32, i32, i32) {
    %c0_i32 = arith.constant 0 : i32
    %c0_i32_0 = arith.constant 0 : i32
    %c0_i32_1 = arith.constant 0 : i32
    return %arg0, %c0_i32, %c0_i32_0 : i32, i32, i32
  }
}

</mosaic_0001>

<bundles_post_ra>
// kernel: tpu_custom_call.1
= control target key start
LH: loop header
LB: loop body
LE: loop exit
PB: predicated region body
PF: predicated region fallthrough
CT: control target
= control target key end

     0   :  { %vm14_vm0 = vcmask 130048   ;;  %s146_s0 = inlined_call_operand.vmem [shape: f32[8,16], index: 0, kind: input, shape index: {}]   ;;  %s147_s1 = inlined_call_operand.vmem [shape: s32[8,1], index: 1, kind: input, shape index: {}]   ;;  %s148_s2 = inlined_call_operand.hbm [shape: f32[1,1,128], index: 2, kind: output, shape index: {}]  }
   0x1   :  { %v12_v0 = vld [vmem:[%s146_s0] sm:$0xff] }
   0x2   :  { %7 = vsyncpa [#allocation3], 0  ;;  %v15_v1 = vsel %vm14_vm0, %v12_v0, -inf  ;;  %v116_v2 = vmov 0   ;;  %v13_v3 = vld [vmem:[%s147_s1] sm:$0xff]  ;;  %v26_v10 = vlaneseq  ;;  %vm52_vm2 = vcmask 7168  }
   0x3   :  { %85 = vset.pattern.permute.xlu0 %v116_v2  ;;  %s117_s0 = smov [#allocation2]   ;;  %s72_s15 = sshll.u32 %s148_s2, 4  ;;  %s73_s15 = int_to_ptr.hbm [resolvable:$true] %s72_s15 }
   0x4   :  { %16 = vmax.xlane.f32.xlu0 %v15_v1  ;;  %v27_v11 = vand.u32 127, %v26_v10  ;;  %s70_s1 = sshll.u32 %s117_s0, 4  ;;  %s71_s1 = int_to_ptr.vmem [resolvable:$true] %s70_s1 }
  0x18   :  { %29 = vperm.xlu0 %85, %v13_v3  }
  0x77   :  { %v17_v4 = vpop.xlane.xlu0 %16 }
  0x78   :  { %v18_v5 = vsub.f32 %v12_v0, %v17_v4 }
  0x7a   :  { %v19_v6 = vmul.f32 1.442695, %v18_v5  ;;  %v37_v7 = vsel %vm14_vm0, %v18_v5, 0.0 }
  0x7b   :  { %38 = vadd.xlane.f32.xlu2 %v37_v7 }
  0x7c   :  { %86 = vpow2.f32 %v19_v6 }
  0x82   :  { %v87_v8 = vpop.eup %86 }
  0x83   :  { %v21_v9 = vsel %vm14_vm0, %v87_v8, 0.0 }
  0x84   :  { %22 = vadd.xlane.f32.xlu1 %v21_v9 }
  0x8a   :  { %v30_v12 = vpop.permute.xlu0 %29 }
  0x8b   :  { %vm31_vm1 = vcmp.eq.s32.totalorder %v27_v11, %v30_v12 }
  0x8c   :  { %v32_v13 = vsel %vm31_vm1, %v18_v5, 0.0 }
  0x8d   :  { %v33_v14 = vsel %vm14_vm0, %v32_v13, 0.0 }
  0x8e   :  { %34 = vadd.xlane.f32.xlu1 %v33_v14 }
  0xee   :  { %v39_v20 = vpop.xlane.xlu2 %38 }
  0xf7   :  { %v23_v15 = vpop.xlane.xlu1 %22 }
  0xf8   :  { %88 = vlog2.f32 %v23_v15 }
  0xfe   :  { %v89_v16 = vpop.eup %88 }
  0xff   :  { %v25_v17 = vmul.f32 0.6931472, %v89_v16 }
 0x101   :  { %v40_v18 = vmul.f32 16.0, %v25_v17  ;;  %v35_v19 = vpop.xlane.xlu1 %34 }
 0x102   :  { %v36_v21 = vsub.f32 %v25_v17, %v35_v19 }
 0x103   :  { %v41_v22 = vsub.f32 %v39_v20, %v40_v18 }
 0x104   :  { %v42_v23 = vmul.f32 0.9, %v36_v21 }
 0x105   :  { %v43_v24 = vmul.f32 0.00625, %v41_v22 }
 0x107   :  { %v44_v25 = vsub.f32 %v42_v23, %v43_v24 }
 0x109   :  { %v53_v26 = vsel %vm52_vm2, %v44_v25, 0.0 }
 0x10a   :  { %54 = vadd.xlane.f32.xlu2 %v53_v26 }
 0x17d   :  { %v55_v27 = vpop.xlane.xlu2 %54 }
 0x17e   :  { %v56_v28 = vrot.slane %v55_v27, 4 }
 0x180   :  { %v57_v29 = vadd.f32 %v56_v28, %v55_v27 }
 0x182   :  { %v58_v30 = vrot.slane %v57_v29, 2 }
 0x184   :  { %v59_v31 = vadd.f32 %v58_v30, %v57_v29 }
 0x186   :  { %v60_v32 = vrot.slane %v59_v31, 1 }
 0x188   :  { %v61_v33 = vadd.f32 %v60_v32, %v59_v31 }
 0x18a   :  { %81 = vpush %v61_v33 }
 0x1bb   :  { %s82_s16 = spop %81 }
 0x1bc   :  { %v63_v34 = vstv %s82_s16 }
 0x1bd   :  { %64 = vst [vmem:[#allocation2] sm:$0x1] %v63_v34 }
 0x1be   :  { %75 = dma.vmem_to_hbm [thread:$0]  %s71_s1, 16, %s73_s15, [#allocation3]  }
 0x1bf   :  { %114 = dma.done.wait [#allocation3], 16  }
 0x1c0   :  { %115 = vsyncadd [#allocation3], 4294967280 }
 0x1c1   :  { %80 = vsyncpa [#allocation3], 1 }

</bundles_post_ra>
